<compile_context>
chip_gen: v7x
topology: tpu7x:2x2x1
jax: 0.10.0
libtpu: 0.0.40
codegen_flags: <defaults>
</compile_context>

<pallas_src>
import functools

import jax
import jax.numpy as jnp
from jax.experimental import pallas as pl
from jax.experimental.pallas import tpu as pltpu


_SMALL_TENSOR_BYTES = 256 * 1024            # below this: skip the kernel entirely
_CHUNK_THRESHOLD_BYTES = 64 * 1024 * 1024   # above this: multi-DMA copy
_MAX_DMA_CHUNKS = 4


def _alias_kernel(x_hbm_ref, o_hbm_ref):
    # Output buffer aliases the input buffer (input_output_aliases={0: 0}):
    # nothing to move, nothing to compute.
    del x_hbm_ref, o_hbm_ref


def _single_dma_kernel(x_hbm_ref, o_hbm_ref, sem):
    # One whole-array HBM -> HBM DMA: start it and wait for completion.
    cp = pltpu.make_async_copy(x_hbm_ref, o_hbm_ref, sem)
    cp.start()
    cp.wait()


def _make_chunked_dma_kernel(chunk_bounds):
    """N independent HBM->HBM DMAs along axis 0; start all, then wait all."""

    def kernel(x_hbm_ref, o_hbm_ref, sems):
        copies = []
        for i, (start, size) in enumerate(chunk_bounds):
            cp = pltpu.make_async_copy(
                x_hbm_ref.at[pl.ds(start, size)],
                o_hbm_ref.at[pl.ds(start, size)],
                sems.at[i],
            )
            cp.start()
            copies.append(cp)
        for cp in copies:
            cp.wait()

    return kernel


def identity_pallas(x, *, donate=False, force_kernel=False,
                    chunk_threshold_bytes=_CHUNK_THRESHOLD_BYTES):
    """Identity forward pass: returns x unchanged (same shape/dtype/values).

    donate=True        -> zero-copy output that aliases the input buffer; only a
                          true no-op when the caller donates x (jit donate_argnums),
                          otherwise XLA inserts a defensive copy.
    force_kernel=True  -> bypass the small-tensor fast path (useful for testing).
    """
    if x.size == 0:
        return x  # nothing to copy; preserve exact shape/dtype

    out_shape = jax.ShapeDtypeStruct(x.shape, x.dtype)
    hbm_spec = pl.BlockSpec(memory_space=pl.ANY)

    if donate:
        # Zero-copy identity: output aliases input, kernel body is a no-op.
        return pl.pallas_call(
            _alias_kernel,
            out_shape=out_shape,
            in_specs=[hbm_spec],
            out_specs=hbm_spec,
            input_output_aliases={0: 0},
            cost_estimate=pl.CostEstimate(
                flops=0, transcendentals=0, bytes_accessed=0),
        )(x)

    nbytes = x.size * x.dtype.itemsize

    # Small-tensor fast path: launch + DMA-descriptor cost dominates; skip kernel.
    if not force_kernel and nbytes < _SMALL_TENSOR_BYTES:
        return x

    cost = pl.CostEstimate(flops=0, transcendentals=0, bytes_accessed=2 * nbytes)

    # Chunked multi-DMA copy for very large tensors (mainly helps v7x, where a
    # single DMA queue may under-fill the ~1.6 TB/s effective copy roofline).
    dim0 = x.shape[0] if x.ndim > 0 else 1
    if x.ndim > 0 and nbytes > chunk_threshold_bytes and dim0 >= 2:
        n_chunks = min(_MAX_DMA_CHUNKS, dim0)
        base, rem = divmod(dim0, n_chunks)
        bounds, start = [], 0
        for i in range(n_chunks):
            size = base + (1 if i < rem else 0)
            bounds.append((start, size))
            start += size
        return pl.pallas_call(
            _make_chunked_dma_kernel(tuple(bounds)),
            out_shape=out_shape,
            in_specs=[hbm_spec],
            out_specs=hbm_spec,
            scratch_shapes=[pltpu.SemaphoreType.DMA((n_chunks,))],
            cost_estimate=cost,
        )(x)

    # Default: single whole-array HBM->HBM DMA (saturates copy roofline on v5e/v6e).
    return pl.pallas_call(
        _single_dma_kernel,
        out_shape=out_shape,
        in_specs=[hbm_spec],
        out_specs=hbm_spec,
        scratch_shapes=[pltpu.SemaphoreType.DMA(())],
        cost_estimate=cost,
    )(x)


if __name__ == "__main__":
    key = jax.random.PRNGKey(0)
    # NCHW-style input consistent with a typical conv-net tensor.
    x = jax.random.normal(key, (2, 4, 16, 16), dtype=jnp.float32)

    # 1) Single-DMA copy path (forced: the 8 KiB test tensor is below the
    #    small-tensor threshold, which would otherwise skip the kernel).
    y = jax.block_until_ready(identity_pallas(x, force_kernel=True))
    assert y.shape == x.shape, (y.shape, x.shape)
    assert y.dtype == x.dtype, (y.dtype, x.dtype)
    assert bool(jnp.all(y == x)), "single-DMA identity mismatch"

    # 2) Chunked multi-semaphore DMA path (threshold lowered to exercise it).
    y2 = jax.block_until_ready(
        identity_pallas(x, force_kernel=True, chunk_threshold_bytes=0))
    assert bool(jnp.all(y2 == x)), "chunked-DMA identity mismatch"

    # 3) Small-tensor fast path: no kernel launched, x returned as-is.
    y3 = identity_pallas(x)
    assert y3.shape == x.shape and y3.dtype == x.dtype
    assert bool(jnp.all(y3 == x)), "fast-path identity mismatch"

    # 4) Zero-copy aliased path, paired with buffer donation so it is a no-op.
    ident_donated = jax.jit(
        functools.partial(identity_pallas, donate=True), donate_argnums=0)
    x_donor = x + 0.0  # separate buffer; donated to the jit call below
    y4 = jax.block_until_ready(ident_donated(x_donor))
    assert y4.shape == x.shape and y4.dtype == x.dtype
    assert bool(jnp.all(y4 == x)), "aliased identity mismatch"

    print("KERNEL_OK")
</pallas_src>

<mosaic_0001>
module attributes {stable_mosaic.version = 11 : i64} {
  func.func @_single_dma_kernel(%arg0: memref<2x4x16x16xf32, #tpu.memory_space<any>>, %arg1: memref<2x4x16x16xf32, #tpu.memory_space<any>>, %arg2: memref<!tpu.dma_semaphore, #tpu.memory_space<semaphore_mem>>) attributes {dimension_semantics = [], scalar_prefetch = 0 : i64, scratch_operands = 1 : i64, tpu.core_type = #tpu.core_type<tc>} {
    tpu.enqueue_dma source(%arg0 : memref<2x4x16x16xf32, #tpu.memory_space<any>>) target(%arg1 : memref<2x4x16x16xf32, #tpu.memory_space<any>>) target_semaphore(%arg2 : memref<!tpu.dma_semaphore, #tpu.memory_space<semaphore_mem>>)
    tpu.wait_dma2 semaphore(%arg2 : memref<!tpu.dma_semaphore, #tpu.memory_space<semaphore_mem>>) src(%arg0 : memref<2x4x16x16xf32, #tpu.memory_space<any>>) dst(%arg1 : memref<2x4x16x16xf32, #tpu.memory_space<any>>)
    return
  }
}

</mosaic_0001>

<bundles_post_ra>
// kernel: tpu_custom_call.1
= control target key start
LH: loop header
LB: loop body
LE: loop exit
PB: predicated region body
PF: predicated region fallthrough
CT: control target
= control target key end

     0   :  { %s36_s6 = smov [#allocation2]   ;;  %s37_s7 = smov [#allocation3]   ;;  %s55_s0 = inlined_call_operand.hbm [shape: f32[2,4,16,16], index: 0, kind: input, shape index: {}]   ;;  %s56_s1 = inlined_call_operand.hbm [shape: f32[2,4,16,16], index: 1, kind: output, shape index: {}]  }
   0x1   :  { %s38_s8 = smov 0  }
   0x2   :  { %18 = dma.general %s55_s0, 2048, %s56_s1, %s36_s6, %s37_s7, [#allocation4], %s38_s8, 0  }
   0x3   :  { %34 = dma.done.wait [#allocation2], 2048 }
   0x4   :  { %35 = vsyncadd [#allocation2], 4294965248 }
   0x5   :  { %24 = vsyncmov [#allocation2] }
   0x8   :  { %s25_s13 = vpop.sfrf %24 }
   0x9   :  { %p30_p0 = scmp.ne.s32.totalorder %s25_s13, 0 }
   0xb   :  { %29 = shalt.err (%p30_p0)  }

</bundles_post_ra>
